<compile_context>
chip_gen: v7x
topology: tpu7x:2x2x1
jax: 0.10.0
libtpu: 0.0.40
codegen_flags: <defaults>
</compile_context>

<pallas_src>
import functools

import jax
import jax.numpy as jnp
from jax.experimental import pallas as pl
from jax.experimental.pallas import tpu as pltpu


# Deterministic synthetic physical parameters (shapes/values per __init__).
PROPERTIES = {"n_state": 4, "n_control": 2}
PARAMS = {
    "m_link1": 1.0, "m_motor1": 0.5, "I_link1": 0.10, "I_motor1": 0.01,
    "m_link2": 0.8, "m_motor2": 0.4, "I_link2": 0.08, "I_motor2": 0.008,
    "l1": 0.5, "l2": 0.4, "a1": 1.0, "a2": 0.8,
    "kr1": 100.0, "kr2": 100.0, "g": 9.81,
    "Fv1": 0.10, "Fv2": 0.10, "Fc1": 0.05, "Fc2": 0.05,
    "s1": 10.0, "s2": 10.0,
}

_LANES = 128      # vreg lane width
_SUBLANES = 8     # vreg sublane count


def _round_up(x, m):
    return ((x + m - 1) // m) * m


def _fold_constants(p):
    """Collapse all physical parameters into per-term Python-float coefficients."""
    return dict(
        m11_const=(p["I_link1"] + p["m_link1"] * p["l1"] ** 2
                   + p["kr1"] ** 2 * p["I_motor1"] + p["I_link2"]
                   + p["m_link2"] * (p["a1"] ** 2 + p["l2"] ** 2)
                   + p["I_motor2"] + p["m_motor2"] * p["a1"] ** 2),
        m11_c2=2.0 * p["m_link2"] * p["a1"] * p["l2"],
        m12_const=(p["I_link2"] + p["m_link2"] * p["l2"] ** 2
                   + p["kr2"] * p["I_motor2"]),
        m12_c2=p["m_link2"] * p["a1"] * p["l2"],
        m22=(p["I_link2"] + p["m_link2"] * p["l2"] ** 2
             + p["kr2"] ** 2 * p["I_motor2"]),
        h_s2=-p["m_link2"] * p["a1"] * p["l2"],
        g1_s1=(p["m_link1"] * p["l1"] + p["m_motor2"] * p["a1"]
               + p["m_link2"] * p["a1"]) * p["g"],
        g_s12=p["m_link2"] * p["l2"] * p["g"],
        fv1=p["Fv1"], fv2=p["Fv2"], fc1=p["Fc1"], fc2=p["Fc2"],
        s1=p["s1"], s2=p["s2"],
    )


def _twolink_kernel(state_ref, action_ref, out_ref, *, c):
    # state_ref: (4, Tb, 128), action_ref: (2, Tb, 128), out_ref: (4, Tb, 128)
    # Each feature slice is a lane/sublane-dense (Tb, 128) slab.
    theta1 = state_ref[0]
    theta2 = state_ref[1]
    dtheta1 = state_ref[2]
    dtheta2 = state_ref[3]
    tau1 = action_ref[0]
    tau2 = action_ref[1]

    s1 = jnp.sin(theta1)
    c2 = jnp.cos(theta2)
    s2 = jnp.sin(theta2)
    s12 = jnp.sin(theta1 + theta2)

    # Mass matrix entries (M21 == M12, M22 is a pure constant).
    M11 = c["m11_const"] + c["m11_c2"] * c2
    M12 = c["m12_const"] + c["m12_c2"] * c2
    M22 = c["m22"]  # Python float, no ones_like broadcast

    # Coriolis terms (C22 == 0 dropped entirely).
    h = c["h_s2"] * s2
    C11 = h * dtheta2
    C12 = h * (dtheta1 + dtheta2)
    C21 = -h * dtheta1

    # Gravity terms.
    g_shared = c["g_s12"] * s12
    g1 = c["g1_s1"] * s1 + g_shared
    g2 = g_shared

    # Right-hand side.
    b1 = (tau1 - g1 - C11 * dtheta1 - C12 * dtheta2
          - c["fv1"] * dtheta1 - c["fc1"] * jnp.tanh(c["s1"] * dtheta1))
    b2 = (tau2 - g2 - C21 * dtheta1
          - c["fv2"] * dtheta2 - c["fc2"] * jnp.tanh(c["s2"] * dtheta2))

    # Per-batch 2x2 solve via Cramer's rule (exact for 2x2).
    det = M11 * M22 - M12 * M12
    inv_det = 1.0 / det  # exact divide; approx reciprocal risks 1e-5 tolerance
    ddtheta1 = (M22 * b1 - M12 * b2) * inv_det
    ddtheta2 = (M11 * b2 - M12 * b1) * inv_det

    # Direct per-row stores: full-width lane-dense vst, no concat temp.
    out_ref[0] = dtheta1.astype(out_ref.dtype)
    out_ref[1] = dtheta2.astype(out_ref.dtype)
    out_ref[2] = ddtheta1.astype(out_ref.dtype)
    out_ref[3] = ddtheta2.astype(out_ref.dtype)


def two_link_arm_forward_packed(state_fm, action_fm, params=PARAMS, *,
                                block_nb=256):
    """Fast path: feature-major, lane-packed inputs (zero HBM relayout).

    state_fm:  (4, NB, 128) float32
    action_fm: (2, NB, 128) float32
    returns    (4, NB, 128) float32
    NB must be a multiple of `tb = min(block_nb, NB)` and of 8.
    """
    _, nb, lanes = state_fm.shape
    assert lanes == _LANES and state_fm.shape[0] == 4
    assert action_fm.shape == (2, nb, _LANES)
    tb = min(block_nb, nb)
    assert tb % _SUBLANES == 0 and nb % tb == 0

    kernel = functools.partial(_twolink_kernel, c=_fold_constants(params))
    return pl.pallas_call(
        kernel,
        out_shape=jax.ShapeDtypeStruct((4, nb, _LANES), jnp.float32),
        grid_spec=pltpu.PrefetchScalarGridSpec(
            num_scalar_prefetch=0,
            grid=(nb // tb,),
            in_specs=[
                pl.BlockSpec((4, tb, _LANES), lambda i: (0, i, 0)),
                pl.BlockSpec((2, tb, _LANES), lambda i: (0, i, 0)),
            ],
            out_specs=pl.BlockSpec((4, tb, _LANES), lambda i: (0, i, 0)),
        ),
        compiler_params=pltpu.CompilerParams(
            dimension_semantics=("parallel",)),  # megacore sharding on v7x
    )(state_fm, action_fm)


def two_link_arm_forward(state, action, params=PARAMS, *, block_nb=256):
    """PyTorch-shaped interface: state (B, 4), action (B, 2) -> (B, 4) f32."""
    assert state.shape[1] == 4 and action.shape[1] == 2
    B = state.shape[0]

    # Pad the batch to a whole number of lane-dense tiles.
    nb = _round_up(pl.cdiv(B, _LANES), _SUBLANES)
    tb = min(block_nb, nb)
    nb = _round_up(nb, tb)
    Bp = nb * _LANES

    state_p = jnp.pad(state.astype(jnp.float32), ((0, Bp - B), (0, 0)))
    action_p = jnp.pad(action.astype(jnp.float32), ((0, Bp - B), (0, 0)))

    # Repack to feature-major (4, NB, 128): layout glue only. A caller that
    # already holds data feature-major should use two_link_arm_forward_packed.
    state_fm = state_p.T.reshape(4, nb, _LANES)
    action_fm = action_p.T.reshape(2, nb, _LANES)

    out_fm = two_link_arm_forward_packed(state_fm, action_fm, params,
                                         block_nb=tb)
    return out_fm.reshape(4, Bp).T[:B]


def _reference_forward(state, action, p=PARAMS):
    """Pure-JAX reference mirroring the PyTorch forward (sanity check)."""
    theta1, theta2, dtheta1, dtheta2 = jnp.split(state, 4, axis=1)
    tau1, tau2 = jnp.split(action, 2, axis=1)
    s1, c2, s2, s12 = (jnp.sin(theta1), jnp.cos(theta2), jnp.sin(theta2),
                       jnp.sin(theta1 + theta2))
    M11 = (p["I_link1"] + p["m_link1"] * p["l1"] ** 2
           + p["kr1"] ** 2 * p["I_motor1"] + p["I_link2"]
           + p["m_link2"] * (p["a1"] ** 2 + p["l2"] ** 2
                             + 2 * p["a1"] * p["l2"] * c2)
           + p["I_motor2"] + p["m_motor2"] * p["a1"] ** 2)
    M12 = (p["I_link2"] + p["m_link2"] * (p["l2"] ** 2 + p["a1"] * p["l2"] * c2)
           + p["kr2"] * p["I_motor2"])
    M21 = M12
    M22 = (p["I_link2"] + p["m_link2"] * p["l2"] ** 2
           + p["kr2"] ** 2 * p["I_motor2"]) * jnp.ones_like(M11)
    h = -p["m_link2"] * p["a1"] * p["l2"] * s2
    C11, C12, C21 = h * dtheta2, h * (dtheta1 + dtheta2), -h * dtheta1
    C22 = jnp.zeros_like(C11)
    g1 = ((p["m_link1"] * p["l1"] + p["m_motor2"] * p["a1"]
           + p["m_link2"] * p["a1"]) * p["g"] * s1
          + p["m_link2"] * p["l2"] * p["g"] * s12)
    g2 = p["m_link2"] * p["l2"] * p["g"] * s12
    b1 = (tau1 - g1 - C11 * dtheta1 - C12 * dtheta2
          - p["Fv1"] * dtheta1 - p["Fc1"] * jnp.tanh(p["s1"] * dtheta1))
    b2 = (tau2 - g2 - C21 * dtheta1 - C22 * dtheta2
          - p["Fv2"] * dtheta2 - p["Fc2"] * jnp.tanh(p["s2"] * dtheta2))
    M = jnp.stack([M11, M12, M21, M22], axis=1).reshape(-1, 2, 2)
    b = jnp.concatenate([b1, b2], axis=1)
    ddtheta = jnp.linalg.solve(M, b[..., None])[..., 0]
    return jnp.concatenate([dtheta1, dtheta2, ddtheta], axis=1)


if __name__ == "__main__":
    key = jax.random.PRNGKey(0)
    k1, k2 = jax.random.split(key)
    B = 200  # small, deliberately not a multiple of 128 to exercise padding
    state = jax.random.normal(k1, (B, PROPERTIES["n_state"]), dtype=jnp.float32)
    action = jax.random.normal(k2, (B, PROPERTIES["n_control"]),
                               dtype=jnp.float32)

    out = two_link_arm_forward(state, action)
    out = jax.block_until_ready(out)

    ref = _reference_forward(state, action)
    assert out.shape == (B, 4)
    assert jnp.allclose(out, ref, rtol=1e-4, atol=1e-5), "mismatch vs reference"
    print("KERNEL_OK")
</pallas_src>

<mosaic_0001>
module attributes {stable_mosaic.version = 11 : i64} {
  func.func @_twolink_kernel(%arg0: i32, %arg1: memref<4x8x128xf32, #tpu.memory_space<vmem>>, %arg2: memref<2x8x128xf32, #tpu.memory_space<vmem>>, %arg3: memref<4x8x128xf32, #tpu.memory_space<vmem>>) attributes {dimension_semantics = [#tpu.dimension_semantics<parallel>], iteration_bounds = array<i64: 1>, scalar_prefetch = 0 : i64, scratch_operands = 0 : i64, tpu.core_type = #tpu.core_type<tc>, window_params = [{transform_indices = @transform_0, window_bounds = array<i64: 4, 8, 128>}, {transform_indices = @transform_1, window_bounds = array<i64: 2, 8, 128>}, {transform_indices = @transform_2, window_bounds = array<i64: 4, 8, 128>}]} {
    %c0 = arith.constant 0 : index
    %c0_0 = arith.constant 0 : index
    %c0_1 = arith.constant 0 : index
    %0 = vector.load %arg1[%c0, %c0_0, %c0_1] : memref<4x8x128xf32, #tpu.memory_space<vmem>>, vector<1x8x128xf32>
    %1 = vector.shape_cast %0 : vector<1x8x128xf32> to vector<8x128xf32>
    %c1 = arith.constant 1 : index
    %c0_2 = arith.constant 0 : index
    %c0_3 = arith.constant 0 : index
    %2 = vector.load %arg1[%c1, %c0_2, %c0_3] : memref<4x8x128xf32, #tpu.memory_space<vmem>>, vector<1x8x128xf32>
    %3 = vector.shape_cast %2 : vector<1x8x128xf32> to vector<8x128xf32>
    %c2 = arith.constant 2 : index
    %c0_4 = arith.constant 0 : index
    %c0_5 = arith.constant 0 : index
    %4 = vector.load %arg1[%c2, %c0_4, %c0_5] : memref<4x8x128xf32, #tpu.memory_space<vmem>>, vector<1x8x128xf32>
    %5 = vector.shape_cast %4 : vector<1x8x128xf32> to vector<8x128xf32>
    %c3 = arith.constant 3 : index
    %c0_6 = arith.constant 0 : index
    %c0_7 = arith.constant 0 : index
    %6 = vector.load %arg1[%c3, %c0_6, %c0_7] : memref<4x8x128xf32, #tpu.memory_space<vmem>>, vector<1x8x128xf32>
    %7 = vector.shape_cast %6 : vector<1x8x128xf32> to vector<8x128xf32>
    %c0_8 = arith.constant 0 : index
    %c0_9 = arith.constant 0 : index
    %c0_10 = arith.constant 0 : index
    %8 = vector.load %arg2[%c0_8, %c0_9, %c0_10] : memref<2x8x128xf32, #tpu.memory_space<vmem>>, vector<1x8x128xf32>
    %9 = vector.shape_cast %8 : vector<1x8x128xf32> to vector<8x128xf32>
    %c1_11 = arith.constant 1 : index
    %c0_12 = arith.constant 0 : index
    %c0_13 = arith.constant 0 : index
    %10 = vector.load %arg2[%c1_11, %c0_12, %c0_13] : memref<2x8x128xf32, #tpu.memory_space<vmem>>, vector<1x8x128xf32>
    %11 = vector.shape_cast %10 : vector<1x8x128xf32> to vector<8x128xf32>
    %12 = math.sin %1 : vector<8x128xf32>
    %13 = math.cos %3 : vector<8x128xf32>
    %14 = math.sin %3 : vector<8x128xf32>
    %15 = arith.addf %1, %3 : vector<8x128xf32>
    %16 = math.sin %15 : vector<8x128xf32>
    %cst = arith.constant 6.400000e-01 : f32
    %17 = vector.broadcast %cst : f32 to vector<8x128xf32>
    %18 = arith.mulf %17, %13 : vector<8x128xf32>
    %cst_14 = arith.constant 1.017660e+02 : f32
    %19 = vector.broadcast %cst_14 : f32 to vector<8x128xf32>
    %20 = arith.addf %19, %18 : vector<8x128xf32>
    %cst_15 = arith.constant 3.200000e-01 : f32
    %21 = vector.broadcast %cst_15 : f32 to vector<8x128xf32>
    %22 = arith.mulf %21, %13 : vector<8x128xf32>
    %cst_16 = arith.constant 1.008000e+00 : f32
    %23 = vector.broadcast %cst_16 : f32 to vector<8x128xf32>
    %24 = arith.addf %23, %22 : vector<8x128xf32>
    %cst_17 = arith.constant -3.200000e-01 : f32
    %25 = vector.broadcast %cst_17 : f32 to vector<8x128xf32>
    %26 = arith.mulf %25, %14 : vector<8x128xf32>
    %27 = arith.mulf %26, %7 : vector<8x128xf32>
    %28 = arith.addf %5, %7 : vector<8x128xf32>
    %29 = arith.mulf %26, %28 : vector<8x128xf32>
    %cst_18 = arith.constant 0.000000e+00 : f32
    %30 = vector.broadcast %cst_18 : f32 to vector<8x128xf32>
    %31 = arith.subf %30, %26 : vector<8x128xf32>
    %32 = arith.mulf %31, %5 : vector<8x128xf32>
    %cst_19 = arith.constant 3.139200e+00 : f32
    %33 = vector.broadcast %cst_19 : f32 to vector<8x128xf32>
    %34 = arith.mulf %33, %16 : vector<8x128xf32>
    %cst_20 = arith.constant 1.667700e+01 : f32
    %35 = vector.broadcast %cst_20 : f32 to vector<8x128xf32>
    %36 = arith.mulf %35, %12 : vector<8x128xf32>
    %37 = arith.addf %36, %34 : vector<8x128xf32>
    %38 = arith.subf %9, %37 : vector<8x128xf32>
    %39 = arith.mulf %27, %5 : vector<8x128xf32>
    %40 = arith.subf %38, %39 : vector<8x128xf32>
    %41 = arith.mulf %29, %7 : vector<8x128xf32>
    %42 = arith.subf %40, %41 : vector<8x128xf32>
    %cst_21 = arith.constant 1.000000e-01 : f32
    %43 = vector.broadcast %cst_21 : f32 to vector<8x128xf32>
    %44 = arith.mulf %43, %5 : vector<8x128xf32>
    %45 = arith.subf %42, %44 : vector<8x128xf32>
    %cst_22 = arith.constant 1.000000e+01 : f32
    %46 = vector.broadcast %cst_22 : f32 to vector<8x128xf32>
    %47 = arith.mulf %46, %5 : vector<8x128xf32>
    %48 = math.tanh %47 : vector<8x128xf32>
    %cst_23 = arith.constant 5.000000e-02 : f32
    %49 = vector.broadcast %cst_23 : f32 to vector<8x128xf32>
    %50 = arith.mulf %49, %48 : vector<8x128xf32>
    %51 = arith.subf %45, %50 : vector<8x128xf32>
    %52 = arith.subf %11, %34 : vector<8x128xf32>
    %53 = arith.mulf %32, %5 : vector<8x128xf32>
    %54 = arith.subf %52, %53 : vector<8x128xf32>
    %cst_24 = arith.constant 1.000000e-01 : f32
    %55 = vector.broadcast %cst_24 : f32 to vector<8x128xf32>
    %56 = arith.mulf %55, %7 : vector<8x128xf32>
    %57 = arith.subf %54, %56 : vector<8x128xf32>
    %cst_25 = arith.constant 1.000000e+01 : f32
    %58 = vector.broadcast %cst_25 : f32 to vector<8x128xf32>
    %59 = arith.mulf %58, %7 : vector<8x128xf32>
    %60 = math.tanh %59 : vector<8x128xf32>
    %cst_26 = arith.constant 5.000000e-02 : f32
    %61 = vector.broadcast %cst_26 : f32 to vector<8x128xf32>
    %62 = arith.mulf %61, %60 : vector<8x128xf32>
    %63 = arith.subf %57, %62 : vector<8x128xf32>
    %cst_27 = arith.constant 8.020800e+01 : f32
    %64 = vector.broadcast %cst_27 : f32 to vector<8x128xf32>
    %65 = arith.mulf %20, %64 : vector<8x128xf32>
    %66 = arith.mulf %24, %24 : vector<8x128xf32>
    %67 = arith.subf %65, %66 : vector<8x128xf32>
    %cst_28 = arith.constant 1.000000e+00 : f32
    %68 = vector.broadcast %cst_28 : f32 to vector<8x128xf32>
    %69 = arith.divf %68, %67 : vector<8x128xf32>
    %cst_29 = arith.constant 8.020800e+01 : f32
    %70 = vector.broadcast %cst_29 : f32 to vector<8x128xf32>
    %71 = arith.mulf %70, %51 : vector<8x128xf32>
    %72 = arith.mulf %24, %63 : vector<8x128xf32>
    %73 = arith.subf %71, %72 : vector<8x128xf32>
    %74 = arith.mulf %73, %69 : vector<8x128xf32>
    %75 = arith.mulf %20, %63 : vector<8x128xf32>
    %76 = arith.mulf %24, %51 : vector<8x128xf32>
    %77 = arith.subf %75, %76 : vector<8x128xf32>
    %78 = arith.mulf %77, %69 : vector<8x128xf32>
    %c0_30 = arith.constant 0 : index
    %c0_31 = arith.constant 0 : index
    %c0_32 = arith.constant 0 : index
    %79 = vector.load %arg3[%c0_30, %c0_31, %c0_32] : memref<4x8x128xf32, #tpu.memory_space<vmem>>, vector<1x8x128xf32>
    %80 = vector.shape_cast %79 : vector<1x8x128xf32> to vector<8x128xf32>
    %81 = vector.shape_cast %5 : vector<8x128xf32> to vector<1x8x128xf32>
    tpu.vector_store %arg3[%c0_30, %c0_31, %c0_32], %81 {strides = array<i32>} : memref<4x8x128xf32, #tpu.memory_space<vmem>>, vector<1x8x128xf32>,
    %c1_33 = arith.constant 1 : index
    %c0_34 = arith.constant 0 : index
    %c0_35 = arith.constant 0 : index
    %82 = vector.load %arg3[%c1_33, %c0_34, %c0_35] : memref<4x8x128xf32, #tpu.memory_space<vmem>>, vector<1x8x128xf32>
    %83 = vector.shape_cast %82 : vector<1x8x128xf32> to vector<8x128xf32>
    %84 = vector.shape_cast %7 : vector<8x128xf32> to vector<1x8x128xf32>
    tpu.vector_store %arg3[%c1_33, %c0_34, %c0_35], %84 {strides = array<i32>} : memref<4x8x128xf32, #tpu.memory_space<vmem>>, vector<1x8x128xf32>,
    %c2_36 = arith.constant 2 : index
    %c0_37 = arith.constant 0 : index
    %c0_38 = arith.constant 0 : index
    %85 = vector.load %arg3[%c2_36, %c0_37, %c0_38] : memref<4x8x128xf32, #tpu.memory_space<vmem>>, vector<1x8x128xf32>
    %86 = vector.shape_cast %85 : vector<1x8x128xf32> to vector<8x128xf32>
    %87 = vector.shape_cast %74 : vector<8x128xf32> to vector<1x8x128xf32>
    tpu.vector_store %arg3[%c2_36, %c0_37, %c0_38], %87 {strides = array<i32>} : memref<4x8x128xf32, #tpu.memory_space<vmem>>, vector<1x8x128xf32>,
    %c3_39 = arith.constant 3 : index
    %c0_40 = arith.constant 0 : index
    %c0_41 = arith.constant 0 : index
    %88 = vector.load %arg3[%c3_39, %c0_40, %c0_41] : memref<4x8x128xf32, #tpu.memory_space<vmem>>, vector<1x8x128xf32>
    %89 = vector.shape_cast %88 : vector<1x8x128xf32> to vector<8x128xf32>
    %90 = vector.shape_cast %78 : vector<8x128xf32> to vector<1x8x128xf32>
    tpu.vector_store %arg3[%c3_39, %c0_40, %c0_41], %90 {strides = array<i32>} : memref<4x8x128xf32, #tpu.memory_space<vmem>>, vector<1x8x128xf32>,
    return
  }
  func.func @transform_0(%arg0: i32) -> (i32, i32, i32) {
    %c0_i32 = arith.constant 0 : i32
    %c0_i32_0 = arith.constant 0 : i32
    %c0_i32_1 = arith.constant 0 : i32
    return %c0_i32, %arg0, %c0_i32_0 : i32, i32, i32
  }
  func.func @transform_1(%arg0: i32) -> (i32, i32, i32) {
    %c0_i32 = arith.constant 0 : i32
    %c0_i32_0 = arith.constant 0 : i32
    %c0_i32_1 = arith.constant 0 : i32
    return %c0_i32, %arg0, %c0_i32_0 : i32, i32, i32
  }
  func.func @transform_2(%arg0: i32) -> (i32, i32, i32) {
    %c0_i32 = arith.constant 0 : i32
    %c0_i32_0 = arith.constant 0 : i32
    %c0_i32_1 = arith.constant 0 : i32
    return %c0_i32, %arg0, %c0_i32_0 : i32, i32, i32
  }
}

</mosaic_0001>

<bundles_post_ra>
// kernel: tpu_custom_call.1
= control target key start
LH: loop header
LB: loop body
LE: loop exit
PB: predicated region body
PF: predicated region fallthrough
CT: control target
= control target key end

     0   :  { %7 = vsyncpa [#allocation3], 0  ;;  %s947_s0 = inlined_call_operand.hbm [shape: f32[4,8,128], index: 0, kind: input, shape index: {}]   ;;  %s948_s1 = inlined_call_operand.hbm [shape: f32[2,8,128], index: 1, kind: input, shape index: {}]   ;;  %s949_s2 = inlined_call_operand.hbm [shape: f32[4,8,128], index: 2, kind: output, shape index: {}]  }
   0x1   :  { %8 = vsyncpa [#allocation6], 0 }
   0x2   :  { %9 = vsyncpa [#allocation4], 0  ;;  %s666_s9 = smov [#allocation2]   ;;  %s594_s13 = scalar_lea.hbm %s947_s0, 512 }
   0x3   :  { %s15_s10 = sshll.u32 %s666_s9, 4  ;;  %p595_p0 = scmp.ne.s32.totalorder %s947_s0, %s594_s13  ;;  %s16_s10 = int_to_ptr.vmem [resolvable:$true] %s15_s10 }
   0x4   :  { %p598_p1 = scmp.lt.u32.totalorder %s594_s13, %s947_s0 }
   0x6   :  { %p600_p2 = pnand %p598_p1, %p595_p0 }
   0x8   :  { %603 = shalt.err (!%p600_p2)
}
   0x9   :  { %s604_s18 = scalar_lea.vmem %s16_s10, 512  ;;  %p609_p4 = scmp.lt.s32.totalorder %s16_s10, %s16_s10 }
   0xa   :  { %p605_p3 = scmp.ne.s32.totalorder %s16_s10, %s604_s18  ;;  %p610_p5 = scmp.lt.s32.totalorder %s604_s18, %s604_s18 }
   0xc   :  { %p611_p6 = por %p610_p5, %p609_p4 }
   0xe   :  { %p612_p7 = pnand %p611_p6, %p605_p3 }
  0x10   :  { %615 = shalt.err (!%p612_p7)
}
  0x11   :  { %s667_s19 = smov 128   ;;  %s668_s20 = smov 8  }
  0x12   :  { %21 = dma.hbm_to_vmem [thread:$0]  %s947_s0, 512, %s16_s10, [#allocation3], %s667_s19, %s667_s19, %s668_s20  }
  0x13   :  { %s669_s23 = smov [#allocation5]   ;;  %s616_s27 = scalar_lea.hbm %s948_s1, 256 }
  0x14   :  { %s27_s24 = sshll.u32 %s669_s23, 4  ;;  %p617_p8 = scmp.ne.s32.totalorder %s948_s1, %s616_s27  ;;  %s28_s24 = int_to_ptr.vmem [resolvable:$true] %s27_s24 }
  0x15   :  { %p620_p9 = scmp.lt.u32.totalorder %s616_s27, %s948_s1 }
  0x17   :  { %p622_p10 = pnand %p620_p9, %p617_p8 }
  0x19   :  { %625 = shalt.err (!%p622_p10)
}
  0x1a   :  { %s626_s4 = scalar_lea.vmem %s28_s24, 256  ;;  %p631_p12 = scmp.lt.s32.totalorder %s28_s24, %s28_s24 }
  0x1b   :  { %p627_p11 = scmp.ne.s32.totalorder %s28_s24, %s626_s4  ;;  %p632_p13 = scmp.lt.s32.totalorder %s626_s4, %s626_s4 }
  0x1d   :  { %p633_p0 = por %p632_p13, %p631_p12 }
  0x1f   :  { %p634_p1 = pnand %p633_p0, %p627_p11 }
  0x21   :  { %637 = shalt.err (!%p634_p1)
}
  0x22   :  { %33 = dma.hbm_to_vmem [thread:$0]  %s948_s1, 256, %s28_s24, [#allocation6], %s667_s19, %s667_s19, %s668_s20  }
  0x23   :  { %660 = dma.done.wait [#allocation3], 512  }
  0x24   :  { %661 = vsyncadd [#allocation3], 4294966784 }
  0x25   :  { %662 = dma.done.wait [#allocation6], 256  }
  0x26   :  { %663 = vsyncadd [#allocation6], 4294967040  ;;  %v722_v0 = vld [vmem:[#allocation2 + $0x10] sm:$0xff]  ;;  %v724_v1 = vld [vmem:[#allocation2 + $0x18] sm:$0xff]  ;;  %v670_v31 = vmov 683565275  }
  0x27   :  { %v726_v2 = vld [vmem:[#allocation2] sm:$0xff]  ;;  %512 = vst [vmem:[#allocation7] sm:$0xff] %v722_v0  ;;  %514 = vst [vmem:[#allocation7 + $0x8] sm:$0xff] %v724_v1  ;;  %v730_v3 = vld [vmem:[#allocation2 + $0x8] sm:$0xff]  ;;  %v671_v33 = vmov 2475754826  }
  0x28   :  { %v50_v4 = vand.u32 2147483647, %v726_v2  ;;  %v53_v5 = vand.u32 2139095040, %v726_v2  ;;  %v154_v6 = vand.u32 2147483647, %v730_v3  ;;  %v157_v7 = vand.u32 2139095040, %v730_v3 }
  0x29   :  { %v738_v8 = vadd.f32 %v730_v3, %v726_v2  ;;  %v672_v35 = vmov 2131351028   ;;  %v673_v37 = vmov 2102212464   ;;  %v674_v39 = vmov 920167782  }
  0x2a   :  { %v54_v9 = vshrl.u32 %v53_v5, 23  ;;  %v158_v10 = vshrl.u32 %v157_v7, 23  ;;  %v57_v11 = vand.u32 8388607, %v50_v4  ;;  %v161_v12 = vand.u32 8388607, %v154_v6 }
  0x2b   :  { %v365_v13 = vand.u32 2139095040, %v738_v8  ;;  %v675_v47 = vmov 1326507024   ;;  %s676_s1 = smov [#allocation7]  }
  0x2c   :  { %v537_v14 = vadd.s32 4294967169, %v54_v9  ;;  %v541_v15 = vadd.s32 4294967169, %v158_v10  ;;  %v58_v19 = vor.u32 8388608, %v57_v11  ;;  %v162_v20 = vor.u32 8388608, %v161_v12  ;;  %s524_s6 = sshll.u32 %s676_s1, 4  ;;  %s525_s6 = int_to_ptr.vmem [resolvable:$true] %s524_s6 }
  0x2d   :  { %v366_v16 = vshrl.u32 %v365_v13, 23  ;;  %s638_s7 = scalar_lea.vmem %s525_s6, 512  ;;  %p643_p3 = scmp.lt.s32.totalorder %s525_s6, %s525_s6 }
  0x2e   :  { %v60_v17 = vadd.s32 1, %v537_v14  ;;  %v164_v18 = vadd.s32 1, %v541_v15  ;;  %v745_v26 = vshll.u32 %v58_v19, 8  ;;  %v747_v28 = vshll.u32 %v162_v20, 8  ;;  %p639_p2 = scmp.ne.s32.totalorder %s525_s6, %s638_s7  ;;  %p644_p4 = scmp.lt.s32.totalorder %s638_s7, %s638_s7 }
  0x2f   :  { %v549_v21 = vadd.s32 4294967169, %v366_v16 }
  0x30   :  { %vm61_vm0 = vcmp.gt.s32.totalorder %v60_v17, 0  ;;  %vm165_vm1 = vcmp.gt.s32.totalorder %v164_v18, 0  ;;  %p645_p5 = por %p644_p4, %p643_p3 }
  0x31   :  { %v62_v22 = vsel %vm61_vm0, %v60_v17, 0  ;;  %v166_v23 = vsel %vm165_vm1, %v164_v18, 0  ;;  %v749_v29 = vadd.s32 1, %v549_v21 }
  0x32   :  { %v63_v24 = vshrl.u32 %v62_v22, 5  ;;  %v64_v25 = vand.u32 31, %v62_v22  ;;  %v168_v27 = vand.u32 31, %v166_v23  ;;  %v756_v41 = vshrl.u32 %v166_v23, 5  ;;  %p646_p6 = pnand %p645_p5, %p639_p2 }
  0x33   :  { %vm373_vm6 = vcmp.gt.s32.totalorder %v749_v29, 0 }
  0x34   :  { %v65_v30 = vsub.s32 32, %v64_v25  ;;  %v67_v32 = vshll.u32 %v670_v31, %v64_v25  ;;  %v70_v34 = vshll.u32 %v671_v33, %v64_v25  ;;  %v73_v36 = vshll.u32 %v672_v35, %v64_v25 }
  0x35   :  { %v76_v38 = vshll.u32 %v673_v37, %v64_v25  ;;  %v79_v40 = vshll.u32 %v674_v39, %v64_v25  ;;  %vm82_vm2 = vcmp.lt.s32.totalorder %v63_v24, 1  ;;  %vm83_vm3 = vcmp.lt.s32.totalorder %v63_v24, 2 }
  0x36   :  { %v66_v42 = vshrl.u32 %v670_v31, %v65_v30  ;;  %v68_v43 = vshrl.u32 %v671_v33, %v65_v30  ;;  %v71_v44 = vshrl.u32 %v672_v35, %v65_v30  ;;  %v74_v45 = vshrl.u32 %v673_v37, %v65_v30 }
  0x37   :  { %v77_v46 = vshrl.u32 %v674_v39, %v65_v30  ;;  %v80_v48 = vshrl.u32 %v675_v47, %v65_v30  ;;  %vm85_vm4 = vcmp.lt.s32.totalorder %v63_v24, 4  ;;  %v169_v52 = vsub.s32 32, %v168_v27 }
  0x38   :  { %v69_v49 = vor.u32 %v68_v43, %v67_v32  ;;  %v72_v50 = vor.u32 %v71_v44, %v70_v34  ;;  %v75_v51 = vor.u32 %v74_v45, %v73_v36  ;;  %vm84_vm5 = vcmp.lt.s32.totalorder %v63_v24, 3 }
  0x39   :  { %v78_v53 = vor.u32 %v77_v46, %v76_v38  ;;  %v81_v54 = vor.u32 %v80_v48, %v79_v40  ;;  %v171_v55 = vshll.u32 %v670_v31, %v168_v27  ;;  %v174_v63 = vshll.u32 %v671_v33, %v168_v27 }
  0x3a   :  { %v86_v56 = vsel %vm82_vm2, %v66_v42, %v69_v49  ;;  %v87_v57 = vsel %vm85_vm4, %v75_v51, 2102212464  ;;  %v90_v58 = vsel %vm82_vm2, %v69_v49, %v72_v50  ;;  %v94_v59 = vsel %vm82_vm2, %v72_v50, %v75_v51 }
  0x3b   :  { %v88_v60 = vsel %vm84_vm5, %v72_v50, %v87_v57  ;;  %v91_v61 = vsel %vm85_vm4, %v78_v53, 920167782  ;;  %v95_v62 = vsel %vm85_vm4, %v81_v54, 1326507024  ;;  %v170_v9 = vshrl.u32 %v670_v31, %v169_v52 }
  0x3c   :  { %v92_v5 = vsel %vm84_vm5, %v75_v51, %v91_v61  ;;  %v96_v7 = vsel %vm84_vm5, %v78_v53, %v95_v62  ;;  %v172_v10 = vshrl.u32 %v671_v33, %v169_v52  ;;  %v89_v11 = vsel %vm83_vm3, %v86_v56, %v88_v60 }
  0x3d   :  { %v93_v12 = vsel %vm83_vm3, %v90_v58, %v92_v5  ;;  %v97_v13 = vsel %vm83_vm3, %v94_v59, %v96_v7  ;;  %v175_v14 = vshrl.u32 %v672_v35, %v169_v52  ;;  %v177_v21 = vshll.u32 %v672_v35, %v168_v27 }
  0x3e   :  { %v777_v15 = vmul.u32.u64.low %v745_v26, %v97_v13  ;;  %v778_v16 = vmul.u32.u64.high %v745_v26, %v97_v13, %v777_v15  ;;  %v781_v17 = vmul.u32.u64.low %v745_v26, %v93_v12  ;;  %v782_v18 = vmul.u32.u64.high %v745_v26, %v93_v12, %v781_v17 }
  0x3f   :  { %v173_v19 = vor.u32 %v172_v10, %v171_v55  ;;  %v176_v20 = vor.u32 %v175_v14, %v174_v63  ;;  %v178_v22 = vshrl.u32 %v673_v37, %v169_v52  ;;  %v180_v23 = vshll.u32 %v673_v37, %v168_v27 }
  0x40   :  { %v181_v24 = vshrl.u32 %v674_v39, %v169_v52  ;;  %v183_v25 = vshll.u32 %v674_v39, %v168_v27  ;;  %v184_v30 = vshrl.u32 %v675_v47, %v169_v52  ;;  %v105_v32 = vmul.u32 %v745_v26, %v89_v11 }
  0x41   :  { %v179_v34 = vor.u32 %v178_v22, %v177_v21  ;;  %vm186_vm7 = vcmp.lt.s32.totalorder %v756_v41, 1  ;;  %vm187_vm8 = vcmp.lt.s32.totalorder %v756_v41, 2  ;;  %vm107_vm9 = vc.u32 %v778_v16, %v781_v17 }
  0x42   :  { %v108_v36 = vadd.s32 1, %v782_v18  ;;  %v182_v38 = vor.u32 %v181_v24, %v180_v23  ;;  %vm188_vm10 = vcmp.lt.s32.totalorder %v756_v41, 3  ;;  %v185_v40 = vor.u32 %v184_v30, %v183_v25 }
  0x43   :  { %vm189_vm11 = vcmp.lt.s32.totalorder %v756_v41, 4  ;;  %v190_v27 = vsel %vm186_vm7, %v170_v9, %v173_v19  ;;  %v194_v42 = vsel %vm186_vm7, %v173_v19, %v176_v20  ;;  %v198_v45 = vsel %vm186_vm7, %v176_v20, %v179_v34 }
  0x44   :  { %v109_v26 = vsel %vm107_vm9, %v108_v36, %v782_v18  ;;  %v191_v43 = vsel %vm189_vm11, %v179_v34, 2102212464  ;;  %v195_v44 = vsel %vm189_vm11, %v182_v38, 920167782  ;;  %v199_v50 = vsel %vm189_vm11, %v185_v40, 1326507024 }
  0x45   :  { %v110_v46 = vadd.s32 %v109_v26, %v105_v32  ;;  %v192_v48 = vsel %vm188_vm10, %v176_v20, %v191_v43  ;;  %v196_v49 = vsel %vm188_vm10, %v179_v34, %v195_v44  ;;  %v200_v53 = vsel %vm188_vm10, %v182_v38, %v199_v50 }
  0x46   :  { %v193_v51 = vsel %vm187_vm8, %v190_v27, %v192_v48  ;;  %v197_v52 = vsel %vm187_vm8, %v194_v42, %v196_v49  ;;  %v374_v54 = vsel %vm373_vm6, %v749_v29, 0  ;;  %v201_v56 = vsel %vm187_vm8, %v198_v45, %v200_v53 }
  0x47   :  { %v111_v55 = vadd.s32 536870912, %v110_v46  ;;  %v810_v57 = vmul.u32.u64.low %v747_v28, %v197_v52  ;;  %v811_v58 = vmul.u32.u64.high %v747_v28, %v197_v52, %v810_v57  ;;  %v376_v62 = vand.u32 31, %v374_v54 }
  0x48   :  { %v815_v59 = vmul.u32.u64.low %v747_v28, %v201_v56  ;;  %v816_v60 = vmul.u32.u64.high %v747_v28, %v201_v56, %v815_v59  ;;  %v209_v63 = vmul.u32 %v747_v28, %v193_v51  ;;  %v362_v7 = vand.u32 2147483647, %v738_v8 }
  0x49   :  { %v818_v61 = vshrl.u32 %v111_v55, 30  ;;  %v212_v5 = vadd.s32 1, %v811_v58  ;;  %v377_v41 = vsub.s32 32, %v376_v62  ;;  %v375_v11 = vshrl.u32 %v374_v54, 5 }
  0x4a   :  { %vm211_vm12 = vc.u32 %v816_v60, %v810_v57  ;;  %v379_v12 = vshll.u32 %v670_v31, %v376_v62  ;;  %v382_v14 = vshll.u32 %v671_v33, %v376_v62  ;;  %v385_v19 = vshll.u32 %v672_v35, %v376_v62 }
  0x4b   :  { %v113_v29 = vshll.u32 %v818_v61, 30  ;;  %v213_v10 = vsel %vm211_vm12, %v212_v5, %v811_v58  ;;  %v380_v28 = vshrl.u32 %v671_v33, %v377_v41  ;;  %v383_v15 = vshrl.u32 %v672_v35, %v377_v41 }
  0x4c   :  { %v214_v13 = vadd.s32 %v213_v10, %v209_v63  ;;  %v386_v20 = vshrl.u32 %v673_v37, %v377_v41  ;;  %v369_v22 = vand.u32 8388607, %v362_v7  ;;  %v388_v23 = vshll.u32 %v673_v37, %v376_v62 }
  0x4d   :  { %v826_v9 = vsub.s32 %v110_v46, %v113_v29  ;;  %v389_v25 = vshrl.u32 %v674_v39, %v377_v41  ;;  %vm394_vm13 = vcmp.lt.s32.totalorder %v375_v11, 1  ;;  %v381_v30 = vor.u32 %v380_v28, %v379_v12 }
  0x4e   :  { %v215_v21 = vadd.s32 536870912, %v214_v13  ;;  %v384_v32 = vor.u32 %v383_v15, %v382_v14  ;;  %vm397_vm14 = vcmp.lt.s32.totalorder %v375_v11, 4  ;;  %v387_v35 = vor.u32 %v386_v20, %v385_v19 }
  0x4f   :  { %v116_v18 = vsub.s32 0, %v826_v9  ;;  %v391_v36 = vshll.u32 %v674_v39, %v376_v62  ;;  %v392_v38 = vshrl.u32 %v675_v47, %v377_v41  ;;  %v370_v27 = vor.u32 8388608, %v369_v22 }
  0x50   :  { %v841_v33 = vshrl.u32 %v215_v21, 30  ;;  %v390_v37 = vor.u32 %v389_v25, %v388_v23  ;;  %vm396_vm15 = vcmp.lt.s32.totalorder %v375_v11, 3  ;;  %vm395_vm0 = vcmp.lt.s32.totalorder %v375_v11, 2 }
  0x51   :  { %v538_v24 = vmin.u32 %v116_v18, %v826_v9  ;;  %v378_v43 = vshrl.u32 %v670_v31, %v377_v41  ;;  %v402_v44 = vsel %vm394_vm13, %v381_v30, %v384_v32  ;;  %v393_v46 = vor.u32 %v392_v38, %v391_v36 }
  0x52   :  { %v217_v40 = vshll.u32 %v841_v33, 30  ;;  %v403_v45 = vsel %vm397_vm14, %v390_v37, 920167782  ;;  %v399_v49 = vsel %vm397_vm14, %v387_v35, 2102212464  ;;  %v410_v50 = vshll.u32 %v370_v27, 8 }
  0x53   :  { %v118_v34 = vclz %v538_v24  ;;  %v404_v39 = vsel %vm396_vm15, %v387_v35, %v403_v45  ;;  %v398_v53 = vsel %vm394_vm13, %v378_v43, %v381_v30  ;;  %v400_v31 = vsel %vm396_vm15, %v384_v32, %v399_v49 }
  0x54   :  { %v218_v26 = vsub.s32 %v214_v13, %v217_v40  ;;  %v405_v51 = vsel %vm395_vm0, %v402_v44, %v404_v39  ;;  %v406_v55 = vsel %vm394_vm13, %v384_v32, %v387_v35  ;;  %v407_v56 = vsel %vm397_vm14, %v393_v46, 1326507024 }
  0x55   :  { %v539_v42 = vadd.s32 4294967294, %v118_v34  ;;  %v408_v59 = vsel %vm396_vm15, %v390_v37, %v407_v56  ;;  %v857_v62 = vmul.u32.u64.low %v410_v50, %v405_v51  ;;  %v858_v63 = vmul.u32.u64.high %v410_v50, %v405_v51, %v857_v62 }
  0x56   :  { %v220_v47 = vsub.s32 0, %v218_v26  ;;  %v106_v29 = vadd.s32 %v781_v17, %v778_v16  ;;  %v401_v41 = vsel %vm395_vm0, %v398_v53, %v400_v31  ;;  %v409_v10 = vsel %vm395_vm0, %v406_v55, %v408_v59 }
  0x57   :  { %vm540_vm1 = vcmp.lt.s32.totalorder %v539_v42, 0  ;;  %v864_v28 = vmul.u32.u64.low %v410_v50, %v409_v10  ;;  %v865_v14 = vmul.u32.u64.high %v410_v50, %v409_v10, %v864_v28  ;;  %v210_v15 = vadd.s32 %v810_v57, %v816_v60 }
  0x58   :  { %v121_v48 = vsel %vm540_vm1, 0, %v539_v42  ;;  %v542_v52 = vmin.u32 %v220_v47, %v218_v26  ;;  %v420_v18 = vadd.s32 1, %v858_v63  ;;  %v417_v20 = vmul.u32 %v410_v50, %v401_v41 }
  0x59   :  { %v126_v54 = vsub.s32 4294967266, %v121_v48  ;;  %v122_v12 = vsub.s32 32, %v121_v48  ;;  %v123_v22 = vshll.u32 %v826_v9, %v121_v48  ;;  %vm419_vm3 = vc.u32 %v865_v14, %v857_v62 }
  0x5a   :  { %v222_v58 = vclz %v542_v52  ;;  %v421_v30 = vsel %vm419_vm3, %v420_v18, %v858_v63  ;;  %vm156_vm4 = vcmp.lt.s32.totalorder %v730_v3, 0  ;;  %vm876_vm5 = vcmp.le.f32.partialorder %v154_v6, 0.7853982 }
  0x5b   :  { %v127_v13 = vadd.s32 127, %v126_v54  ;;  %v124_v11 = vshrl.u32 %v106_v29, %v122_v12  ;;  %v422_v32 = vadd.s32 %v421_v30, %v417_v20  ;;  %v240_v49 = vsub.s32 4, %v841_v33 }
  0x5c   :  { %v543_v5 = vadd.s32 4294967294, %v222_v58  ;;  %vm52_vm6 = vcmp.lt.s32.totalorder %v726_v2, 0  ;;  %vm888_vm7 = vcmp.le.f32.partialorder %v50_v4, 0.7853982  ;;  %v418_v58 = vadd.s32 %v857_v62, %v865_v14 }
  0x5d   :  { %v128_v23 = vshll.u32 %v127_v13, 23  ;;  %v125_v34 = vor.u32 %v124_v11, %v123_v22  ;;  %v423_v36 = vadd.s32 536870912, %v422_v32  ;;  %v241_v6 = vsel %vm156_vm4, %v240_v49, %v841_v33 }
  0x5e   :  { %vm544_vm2 = vcmp.lt.s32.totalorder %v543_v5, 0  ;;  %v243_v56 = vsel %vm876_vm5, 0, %v241_v6  ;;  %vm364_vm13 = vcmp.lt.s32.totalorder %v738_v8, 0  ;;  %vm909_vm14 = vcmp.le.f32.partialorder %v362_v7, 0.7853982 }
  0x5f   :  { %v225_v19 = vsel %vm544_vm2, 0, %v543_v5  ;;  %v129_v35 = vor.u32 4788187, %v128_v23  ;;  %v424_v27 = vshrl.u32 %v423_v36, 30  ;;  %v132_v9 = vcvt.s32.f32 %v125_v34 }
  0x60   :  { %v226_v21 = vsub.s32 32, %v225_v19  ;;  %v227_v16 = vshll.u32 %v218_v26, %v225_v19  ;;  %v230_v17 = vsub.s32 4294967266, %v225_v19  ;;  %v136_v5 = vsub.s32 4, %v818_v61 }
  0x61   :  { %v130_v42 = vand.u32 2147483647, %v129_v35  ;;  %v425_v26 = vshll.u32 %v424_v27, 30  ;;  %v350_v41 = vadd.s32 3, %v243_v56  ;;  %v247_v19 = vand.u32 3, %v243_v56 }
  0x62   :  { %v228_v24 = vshrl.u32 %v210_v15, %v226_v21  ;;  %v231_v25 = vadd.s32 127, %v230_v17  ;;  %v137_v62 = vsel %vm52_vm6, %v136_v5, %v818_v61  ;;  %vm246_vm1 = vweird.f32 %v730_v3 }
  0x63   :  { %v426_v44 = vsub.s32 %v422_v32, %v425_v26  ;;  %v133_v39 = vmul.f32 %v132_v9, %v130_v42  ;;  %v351_v14 = vand.u32 3, %v350_v41  ;;  %v139_v17 = vsel %vm888_vm7, 0, %v137_v62 }
  0x64   :  { %v229_v57 = vor.u32 %v228_v24, %v227_v16  ;;  %v232_v60 = vshll.u32 %v231_v25, 23  ;;  %v448_v16 = vsub.s32 4, %v424_v27  ;;  %vm249_vm11 = vcmp.eq.s32.totalorder %v247_v19, 0 }
  0x65   :  { %v428_v48 = vsub.s32 0, %v426_v44  ;;  %v134_v52 = vxor.u32 2147483648, %v133_v39  ;;  %vm353_vm9 = vcmp.eq.s32.totalorder %v351_v14, 0  ;;  %vm356_vm10 = vcmp.eq.s32.totalorder %v351_v14, 2 }
  0x66   :  { %v233_v38 = vor.u32 4788187, %v232_v60  ;;  %v236_v40 = vcvt.s32.f32 %v229_v57  ;;  %vm252_vm12 = vcmp.eq.s32.totalorder %v247_v19, 2  ;;  %v143_v61 = vadd.s32 3, %v139_v17 }
  0x67   :  { %v550_v51 = vmin.u32 %v428_v48, %v426_v44  ;;  %v135_v55 = vsel %vm52_vm6, %v134_v52, %v133_v39  ;;  %v449_v30 = vsel %vm364_vm13, %v448_v16, %v424_v27  ;;  %vm352_vm15 = vcmp.lt.s32.totalorder %v351_v14, 2 }
  0x68   :  { %v234_v37 = vand.u32 2147483647, %v233_v38  ;;  %v138_v4 = vsel %vm888_vm7, %v726_v2, %v135_v55  ;;  %vm248_vm0 = vcmp.lt.s32.totalorder %v247_v19, 2  ;;  %v144_v42 = vand.u32 3, %v143_v61  ;;  %v47_v19 = vld [vmem:[#allocation5] sm:$0xff] }
  0x69   :  { %v430_v53 = vclz %v550_v51  ;;  %v495_v39 = vmul.f32 10.0, %v724_v1  ;;  %v486_v52 = vmul.f32 10.0, %v722_v0 }
  0x6a   :  { %v237_v43 = vmul.f32 %v236_v40, %v234_v37  ;;  %v451_v40 = vsel %vm909_vm14, 0, %v449_v30  ;;  %vm146_vm2 = vcmp.eq.s32.totalorder %v144_v42, 0  ;;  %vm149_vm3 = vcmp.eq.s32.totalorder %v144_v42, 2 }
  0x6b   :  { %v551_v54 = vadd.s32 4294967294, %v430_v53  ;;  %v455_v26 = vadd.s32 3, %v451_v40 }
  0x6c   :  { %v238_v46 = vxor.u32 2147483648, %v237_v43 }
  0x6d   :  { %vm552_vm8 = vcmp.lt.s32.totalorder %v551_v54, 0  ;;  %v456_v48 = vand.u32 3, %v455_v26 }
  0x6e   :  { %v239_v47 = vsel %vm156_vm4, %v238_v46, %v237_v43  ;;  %v433_v59 = vsel %vm552_vm8, 0, %v551_v54  ;;  %vm145_vm4 = vcmp.lt.s32.totalorder %v144_v42, 2 }
  0x6f   :  { %v242_v50 = vsel %vm876_vm5, %v730_v3, %v239_v47  ;;  %v434_v63 = vsub.s32 32, %v433_v59  ;;  %v435_v33 = vshll.u32 %v426_v44, %v433_v59  ;;  %v438_v29 = vsub.s32 4294967266, %v433_v59 }
  0x70   :  { %576 = vcosq.f32 %v242_v50  ;;  %vm142_vm5 = vweird.f32 %v726_v2  ;;  %vm461_vm6 = vcmp.eq.s32.totalorder %v456_v48, 2  ;;  %vm458_vm7 = vcmp.eq.s32.totalorder %v456_v48, 0 }
  0x71   :  { %578 = vsinq.f32 %v242_v50  ;;  %v436_v10 = vshrl.u32 %v418_v58, %v434_v63  ;;  %v439_v12 = vadd.s32 127, %v438_v29  ;;  %vm457_vm8 = vcmp.lt.s32.totalorder %v456_v48, 2 }
  0x72   :  { %580 = vcosq.f32 %v138_v4  ;;  %v472_v29 = vadd.f32 %v724_v1, %v722_v0 }
  0x73   :  { %v437_v28 = vor.u32 %v436_v10, %v435_v33  ;;  %v440_v15 = vshll.u32 %v439_v12, 23  ;;  %582 = vsinq.f32 %v138_v4 }
  0x75   :  { %v441_v20 = vor.u32 4788187, %v440_v15  ;;  %v444_v21 = vcvt.s32.f32 %v437_v28  ;;  %v49_v28 = vld [vmem:[#allocation5 + $0x8] sm:$0xff] }
  0x77   :  { %v442_v23 = vand.u32 2147483647, %v441_v20 }
  0x79   :  { %v445_v24 = vmul.f32 %v444_v21, %v442_v23 }
  0x7a   :  { %v577_v13 = vpop.eup %576 }
  0x7b   :  { %v579_v18 = vpop.eup %578  ;;  %v253_v11 = vxor.u32 2147483648, %v577_v13  ;;  %v446_v60 = vxor.u32 2147483648, %v445_v24 }
  0x7c   :  { %v250_v22 = vxor.u32 2147483648, %v579_v18  ;;  %v581_v36 = vpop.eup %580 }
  0x7d   :  { %v358_v57 = vsel %vm356_vm10, %v253_v11, %v579_v18  ;;  %v254_v35 = vsel %vm252_vm12, %v253_v11, %v579_v18  ;;  %v447_v38 = vsel %vm364_vm13, %v446_v60, %v445_v24  ;;  %v583_v37 = vpop.eup %582  ;;  %v150_v44 = vxor.u32 2147483648, %v581_v36 }
  0x7e   :  { %v355_v32 = vsel %vm353_vm9, %v577_v13, %v250_v22  ;;  %v251_v34 = vsel %vm249_vm11, %v577_v13, %v250_v22  ;;  %v450_v27 = vsel %vm909_vm14, %v738_v8, %v447_v38  ;;  %v147_v43 = vxor.u32 2147483648, %v583_v37 }
  0x7f   :  { %v359_v7 = vsel %vm352_vm15, %v355_v32, %v358_v57  ;;  %v255_v9 = vsel %vm248_vm0, %v251_v34, %v254_v35  ;;  %584 = vcosq.f32 %v450_v27  ;;  %v151_v49 = vsel %vm149_vm3, %v150_v44, %v583_v37 }
  0x80   :  { %586 = vsinq.f32 %v450_v27  ;;  %v360_v45 = vsel %vm246_vm1, nan, %v359_v7  ;;  %v256_v46 = vsel %vm246_vm1, nan, %v255_v9  ;;  %v148_v47 = vsel %vm146_vm2, %v581_v36, %v147_v43 }
  0x81   :  { %v470_v3 = vmul.f32 -0.32, %v360_v45  ;;  %v466_v50 = vmul.f32 0.64, %v256_v46  ;;  %v468_v51 = vmul.f32 0.32, %v256_v46  ;;  %588 = vtanh.f32 %v495_v39 }
  0x82   :  { %v152_v53 = vsel %vm145_vm4, %v148_v47, %v151_v49  ;;  %590 = vtanh.f32 %v486_v52  ;;  %vm454_vm9 = vweird.f32 %v738_v8  ;;  %v493_v22 = vmul.f32 0.1, %v724_v1 }
  0x83   :  { %v474_v6 = vsub.f32 0.0, %v470_v3  ;;  %v467_v31 = vadd.f32 101.766, %v466_v50  ;;  %v469_v55 = vadd.f32 1.008, %v468_v51  ;;  %v153_v59 = vsel %vm142_vm5, nan, %v152_v53 }
  0x84   :  { %v471_v12 = vmul.f32 %v470_v3, %v724_v1  ;;  %v477_v13 = vmul.f32 16.677, %v153_v59  ;;  %v473_v18 = vmul.f32 %v472_v29, %v470_v3  ;;  %v484_v32 = vmul.f32 0.1, %v722_v0 }
  0x85   :  { %v475_v2 = vmul.f32 %v474_v6, %v722_v0  ;;  %v499_v4 = vmul.f32 80.208, %v467_v31  ;;  %v500_v41 = vmul.f32 %v469_v55, %v469_v55 }
  0x86   :  { %v480_v16 = vmul.f32 %v471_v12, %v722_v0  ;;  %v482_v23 = vmul.f32 %v473_v18, %v724_v1 }
  0x87   :  { %v491_v14 = vmul.f32 %v475_v2, %v722_v0  ;;  %v501_v20 = vsub.f32 %v499_v4, %v500_v41 }
  0x89   :  { %v585_v54 = vpop.eup %584  ;;  %592 = vrcp.f32 %v501_v20 }
  0x8a   :  { %v587_v56 = vpop.eup %586  ;;  %v462_v58 = vxor.u32 2147483648, %v585_v54 }
  0x8b   :  { %v459_v63 = vxor.u32 2147483648, %v587_v56  ;;  %v589_v8 = vpop.eup %588 }
  0x8c   :  { %v463_v33 = vsel %vm461_vm6, %v462_v58, %v587_v56  ;;  %v497_v61 = vmul.f32 0.05, %v589_v8  ;;  %v591_v25 = vpop.eup %590 }
  0x8d   :  { %v460_v5 = vsel %vm458_vm7, %v585_v54, %v459_v63  ;;  %v488_v34 = vmul.f32 0.05, %v591_v25 }
  0x8e   :  { %v464_v10 = vsel %vm457_vm8, %v460_v5, %v463_v33 }
  0x8f   :  { %v465_v15 = vsel %vm454_vm9, nan, %v464_v10 }
  0x90   :  { %v476_v62 = vmul.f32 3.1392, %v465_v15 }
  0x92   :  { %v478_v21 = vadd.f32 %v477_v13, %v476_v62  ;;  %v490_v17 = vsub.f32 %v49_v28, %v476_v62 }
  0x93   :  { %v593_v27 = vpop.eup %592 }
  0x94   :  { %v479_v11 = vsub.f32 %v47_v19, %v478_v21  ;;  %v492_v24 = vsub.f32 %v490_v17, %v491_v14 }
  0x96   :  { %v481_v30 = vsub.f32 %v479_v11, %v480_v16  ;;  %v494_v57 = vsub.f32 %v492_v24, %v493_v22 }
  0x98   :  { %v483_v60 = vsub.f32 %v481_v30, %v482_v23  ;;  %v498_v35 = vsub.f32 %v494_v57, %v497_v61 }
  0x9a   :  { %v485_v36 = vsub.f32 %v483_v60, %v484_v32  ;;  %v505_v40 = vmul.f32 %v498_v35, %v469_v55  ;;  %v508_v37 = vmul.f32 %v498_v35, %v467_v31 }
  0x9c   :  { %v489_v38 = vsub.f32 %v485_v36, %v488_v34 }
  0x9e   :  { %v504_v42 = vmul.f32 80.208, %v489_v38  ;;  %v509_v7 = vmul.f32 %v489_v38, %v469_v55 }
  0xa0   :  { %v506_v1 = vsub.f32 %v504_v42, %v505_v40  ;;  %v510_v9 = vsub.f32 %v508_v37, %v509_v7 }
  0xa2   :  { %v507_v26 = vmul.f32 %v593_v27, %v506_v1  ;;  %v511_v43 = vmul.f32 %v593_v27, %v510_v9 }
  0xa4   :  { %516 = vst [vmem:[#allocation7 + $0x10] sm:$0xff] %v507_v26  ;;  %518 = vst [vmem:[#allocation7 + $0x18] sm:$0xff] %v511_v43 }
  0xa5   :  { %649 = shalt.err (!%p646_p6)
}
  0xa6   :  { %s650_s10 = scalar_lea.hbm %s949_s2, 512 }
  0xa7   :  { %p651_p7 = scmp.ne.s32.totalorder %s949_s2, %s650_s10  ;;  %p654_p8 = scmp.lt.u32.totalorder %s650_s10, %s949_s2 }
  0xa9   :  { %p656_p9 = pnand %p654_p8, %p651_p7 }
  0xab   :  { %659 = shalt.err (!%p656_p9)
}
  0xac   :  { %530 = dma.vmem_to_hbm [thread:$0]  %s525_s6, 512, %s949_s2, [#allocation4], %s667_s19, %s667_s19, %s668_s20  }
  0xad   :  { %664 = dma.done.wait [#allocation4], 512  }
  0xae   :  { %665 = vsyncadd [#allocation4], 4294966784 }
  0xaf   :  { %534 = vsyncpa [#allocation3], 1 }
  0xb0   :  { %535 = vsyncpa [#allocation6], 1 }
  0xb1   :  { %536 = vsyncpa [#allocation4], 1 }

</bundles_post_ra>
